<compile_context>
chip_gen: v5e
topology: v5e:2x2
jax: 0.10.0
libtpu: 0.0.40
codegen_flags: <defaults>
</compile_context>

<pallas_src>
import functools

import jax
import jax.numpy as jnp
from jax.experimental import pallas as pl
from jax.experimental.pallas import tpu as pltpu


def _round_up(x: int, m: int) -> int:
    return ((x + m - 1) // m) * m


def _fused_mlp_kernel(x_ref, *refs, num_layers: int, sigmoid_output: bool):
    """Whole MLP fused on one batch tile.

    refs = (w0, b0, w1, b1, ..., w_{L-1}, b_{L-1}, out_ref).
    Weights are already transposed to (in, out) and lane-padded; intermediates
    live entirely on-chip, only the final block is written out.
    """
    o_ref = refs[-1]
    params = refs[:-1]

    h = x_ref[...].astype(jnp.float32)
    for i in range(num_layers):
        w = params[2 * i][...]
        b = params[2 * i + 1][...]          # (1, out) -> broadcasts over rows
        h = jnp.dot(h, w, preferred_element_type=jnp.float32) + b   # MXU + VPU
        if i < num_layers - 1:
            h = jnp.maximum(h, 0.0)         # VPU ReLU
    if sigmoid_output:
        h = jax.nn.sigmoid(h)               # EUP
    o_ref[...] = h.astype(o_ref.dtype)


def _fused_mlp(x, weights_t, biases, *, sigmoid_output: bool, tile_b: int = 512):
    """x: (B, d_in); weights_t[i]: (in_i, out_i) padded; biases[i]: (1, out_i)."""
    B, d_in = x.shape
    num_layers = len(weights_t)
    d_out = weights_t[-1].shape[1]

    # Batch tile: full-array block for small B, otherwise 512 rows (multiple of
    # 8, double-buffers comfortably inside a 32 MiB budget even on v7x).
    TILE_B = B if B <= tile_b else tile_b
    grid = (pl.cdiv(B, TILE_B),)

    in_specs = [pl.BlockSpec((TILE_B, d_in), lambda i: (i, 0))]
    args = [x]
    for w_t, b in zip(weights_t, biases):
        in_specs.append(pl.BlockSpec(w_t.shape, lambda i: (0, 0)))
        in_specs.append(pl.BlockSpec(b.shape, lambda i: (0, 0)))
        args.append(w_t)
        args.append(b)

    flops = 2 * B * sum(int(w.shape[0]) * int(w.shape[1]) for w in weights_t)
    param_bytes = sum(int(a.size) * a.dtype.itemsize for a in args[1:])
    bytes_accessed = (B * d_in + B * d_out) * x.dtype.itemsize + param_bytes
    cost = pl.CostEstimate(
        flops=flops,
        transcendentals=(B * d_out) if sigmoid_output else 0,
        bytes_accessed=bytes_accessed,
    )

    kernel = functools.partial(
        _fused_mlp_kernel, num_layers=num_layers, sigmoid_output=sigmoid_output
    )

    return pl.pallas_call(
        kernel,
        out_shape=jax.ShapeDtypeStruct((B, d_out), x.dtype),
        grid=grid,
        in_specs=in_specs,
        out_specs=pl.BlockSpec((TILE_B, d_out), lambda i: (i, 0)),
        compiler_params=pltpu.CompilerParams(
            # batch axis is independent -> shard across TCs on v7x (no-op on
            # v5e/v6e); 32 MiB VMEM cap fits v7x's 64 MiB physical VMEM.
            dimension_semantics=("parallel",),
            vmem_limit_bytes=32 * 1024 * 1024,
        ),
        cost_estimate=cost,
    )(*args)


class MLPPallas:
    """JAX/Pallas equivalent of the PyTorch MLP module (forward fused in 1 kernel)."""

    def __init__(self, input_dim, hidden_dim, output_dim, num_layers,
                 sigmoid_output=False, key=None, dtype=jnp.float32,
                 tile_b=512):
        self.num_layers = num_layers
        self.sigmoid_output = sigmoid_output

        h = [hidden_dim] * (num_layers - 1)
        dims_in = [input_dim] + h
        dims_out = h + [output_dim]

        if key is None:
            key = jax.random.PRNGKey(0)

        # PyTorch-convention parameters (W: (out, in), b: (out,)),
        # init ~ U(-1/sqrt(fan_in), 1/sqrt(fan_in)) like nn.Linear.
        self.weights = []
        self.biases = []
        for n, k in zip(dims_in, dims_out):
            key, kw, kb = jax.random.split(key, 3)
            bound = 1.0 / float(n) ** 0.5
            w = jax.random.uniform(kw, (k, n), dtype, -bound, bound)
            b = jax.random.uniform(kb, (k,), dtype, -bound, bound)
            self.weights.append(w)
            self.biases.append(b)

        # Pre-transpose once and zero-pad hidden widths to multiples of 128 so
        # intermediate activations are lane-dense. Input/output widths stay
        # unpadded (full-array BlockSpecs; only the final store is narrow).
        pad_out = [_round_up(d, 128) for d in dims_out[:-1]] + [output_dim]
        pad_in = [input_dim] + pad_out[:-1]
        self.w_t_pad = []
        self.b_pad = []
        for i, (w, b) in enumerate(zip(self.weights, self.biases)):
            k, n = w.shape  # (out, in)
            wt = jnp.zeros((pad_in[i], pad_out[i]), dtype).at[:n, :k].set(w.T)
            bp = jnp.zeros((1, pad_out[i]), dtype).at[0, :k].set(b)
            self.w_t_pad.append(wt)
            self.b_pad.append(bp)

        # NOTE: for very large batches on v6e/v7x a bf16 cast of x/w before the
        # jnp.dot (keeping f32 accumulation) would roughly double MXU rate;
        # kept f32 here to match the reference bit-for-bit at small sizes.
        self._forward = jax.jit(functools.partial(
            _fused_mlp, sigmoid_output=sigmoid_output, tile_b=tile_b))

    def __call__(self, x):
        return self._forward(x, tuple(self.w_t_pad), tuple(self.b_pad))


def _reference_forward(mlp: MLPPallas, x):
    """Pure-JAX reference matching the PyTorch forward exactly."""
    for i, (w, b) in enumerate(zip(mlp.weights, mlp.biases)):
        y = x @ w.T + b
        x = jnp.maximum(y, 0.0) if i < mlp.num_layers - 1 else y
    if mlp.sigmoid_output:
        x = jax.nn.sigmoid(x)
    return x


if __name__ == "__main__":
    key = jax.random.PRNGKey(0)
    key, kx_small, kx_big = jax.random.split(key, 3)

    input_dim = 32
    hidden_dim = 64
    output_dim = 16
    num_layers = 3

    mlp = MLPPallas(input_dim, hidden_dim, output_dim, num_layers,
                    sigmoid_output=True, key=jax.random.PRNGKey(0))

    # Small batch: single full-array block (grid=(1,)).
    x_small = jax.random.normal(kx_small, (8, input_dim), jnp.float32)
    out_small = jax.block_until_ready(mlp(x_small))
    ref_small = jax.block_until_ready(_reference_forward(mlp, x_small))
    assert out_small.shape == (8, output_dim), out_small.shape
    assert jnp.allclose(out_small, ref_small, atol=1e-5, rtol=1e-5), \
        f"max abs err {jnp.max(jnp.abs(out_small - ref_small))}"

    # Larger batch: exercises batch tiling (grid=(2,), TILE_B=512, parallel axis).
    x_big = jax.random.normal(kx_big, (1024, input_dim), jnp.float32)
    out_big = jax.block_until_ready(mlp(x_big))
    ref_big = jax.block_until_ready(_reference_forward(mlp, x_big))
    assert out_big.shape == (1024, output_dim), out_big.shape
    assert jnp.allclose(out_big, ref_big, atol=1e-5, rtol=1e-5), \
        f"max abs err {jnp.max(jnp.abs(out_big - ref_big))}"

    print("KERNEL_OK")
</pallas_src>

<mosaic_0001>
module attributes {stable_mosaic.version = 11 : i64} {
  func.func @_fused_mlp_kernel(%arg0: i32, %arg1: memref<8x32xf32, #tpu.memory_space<vmem>>, %arg2: memref<32x128xf32, #tpu.memory_space<vmem>>, %arg3: memref<1x128xf32, #tpu.memory_space<vmem>>, %arg4: memref<128x128xf32, #tpu.memory_space<vmem>>, %arg5: memref<1x128xf32, #tpu.memory_space<vmem>>, %arg6: memref<128x16xf32, #tpu.memory_space<vmem>>, %arg7: memref<1x16xf32, #tpu.memory_space<vmem>>, %arg8: memref<8x16xf32, #tpu.memory_space<vmem>>) attributes {dimension_semantics = [#tpu.dimension_semantics<parallel>], iteration_bounds = array<i64: 1>, scalar_prefetch = 0 : i64, scratch_operands = 0 : i64, tpu.core_type = #tpu.core_type<tc>, window_params = [{transform_indices = @transform_0, window_bounds = array<i64: 8, 32>}, {pipeline_mode = #tpu.pipeline_mode<synchronous>, transform_indices = @transform_1, window_bounds = array<i64: 32, 128>}, {pipeline_mode = #tpu.pipeline_mode<synchronous>, transform_indices = @transform_2, window_bounds = array<i64: 1, 128>}, {pipeline_mode = #tpu.pipeline_mode<synchronous>, transform_indices = @transform_3, window_bounds = array<i64: 128, 128>}, {pipeline_mode = #tpu.pipeline_mode<synchronous>, transform_indices = @transform_4, window_bounds = array<i64: 1, 128>}, {pipeline_mode = #tpu.pipeline_mode<synchronous>, transform_indices = @transform_5, window_bounds = array<i64: 128, 16>}, {pipeline_mode = #tpu.pipeline_mode<synchronous>, transform_indices = @transform_6, window_bounds = array<i64: 1, 16>}, {transform_indices = @transform_7, window_bounds = array<i64: 8, 16>}]} {
    %c0 = arith.constant 0 : index
    %c0_0 = arith.constant 0 : index
    %0 = vector.load %arg1[%c0, %c0_0] : memref<8x32xf32, #tpu.memory_space<vmem>>, vector<8x32xf32>
    %c0_1 = arith.constant 0 : index
    %c0_2 = arith.constant 0 : index
    %1 = vector.load %arg2[%c0_1, %c0_2] : memref<32x128xf32, #tpu.memory_space<vmem>>, vector<32x128xf32>
    %c0_3 = arith.constant 0 : index
    %c0_4 = arith.constant 0 : index
    %2 = vector.load %arg3[%c0_3, %c0_4] : memref<1x128xf32, #tpu.memory_space<vmem>>, vector<1x128xf32>
    %cst = arith.constant dense<0.000000e+00> : vector<8x128xf32>
    %3 = tpu.matmul %0, %1, %cst {dimension_numbers = #tpu.dot_dimension_numbers<[1], [0], [0], [1], [0, 0, 1, 1], [], []>} : vector<8x32xf32>, vector<32x128xf32>, vector<8x128xf32> -> vector<8x128xf32>
    %4 = vector.broadcast %2 : vector<1x128xf32> to vector<8x128xf32>
    %5 = arith.addf %3, %4 : vector<8x128xf32>
    %cst_5 = arith.constant 0.000000e+00 : f32
    %6 = vector.broadcast %cst_5 : f32 to vector<8x128xf32>
    %7 = arith.maximumf %5, %6 : vector<8x128xf32>
    %c0_6 = arith.constant 0 : index
    %c0_7 = arith.constant 0 : index
    %8 = vector.load %arg4[%c0_6, %c0_7] : memref<128x128xf32, #tpu.memory_space<vmem>>, vector<128x128xf32>
    %c0_8 = arith.constant 0 : index
    %c0_9 = arith.constant 0 : index
    %9 = vector.load %arg5[%c0_8, %c0_9] : memref<1x128xf32, #tpu.memory_space<vmem>>, vector<1x128xf32>
    %cst_10 = arith.constant dense<0.000000e+00> : vector<8x128xf32>
    %10 = tpu.matmul %7, %8, %cst_10 {dimension_numbers = #tpu.dot_dimension_numbers<[1], [0], [0], [1], [0, 0, 1, 1], [], []>} : vector<8x128xf32>, vector<128x128xf32>, vector<8x128xf32> -> vector<8x128xf32>
    %11 = vector.broadcast %9 : vector<1x128xf32> to vector<8x128xf32>
    %12 = arith.addf %10, %11 : vector<8x128xf32>
    %cst_11 = arith.constant 0.000000e+00 : f32
    %13 = vector.broadcast %cst_11 : f32 to vector<8x128xf32>
    %14 = arith.maximumf %12, %13 : vector<8x128xf32>
    %c0_12 = arith.constant 0 : index
    %c0_13 = arith.constant 0 : index
    %15 = vector.load %arg6[%c0_12, %c0_13] : memref<128x16xf32, #tpu.memory_space<vmem>>, vector<128x16xf32>
    %c0_14 = arith.constant 0 : index
    %c0_15 = arith.constant 0 : index
    %16 = vector.load %arg7[%c0_14, %c0_15] : memref<1x16xf32, #tpu.memory_space<vmem>>, vector<1x16xf32>
    %cst_16 = arith.constant dense<0.000000e+00> : vector<8x16xf32>
    %17 = tpu.matmul %14, %15, %cst_16 {dimension_numbers = #tpu.dot_dimension_numbers<[1], [0], [0], [1], [0, 0, 1, 1], [], []>} : vector<8x128xf32>, vector<128x16xf32>, vector<8x16xf32> -> vector<8x16xf32>
    %18 = vector.broadcast %16 : vector<1x16xf32> to vector<8x16xf32>
    %19 = arith.addf %17, %18 : vector<8x16xf32>
    %20 = arith.negf %19 : vector<8x16xf32>
    %21 = math.exp %20 : vector<8x16xf32>
    %cst_17 = arith.constant 1.000000e+00 : f32
    %22 = vector.broadcast %cst_17 : f32 to vector<8x16xf32>
    %23 = arith.addf %22, %21 : vector<8x16xf32>
    %24 = arith.divf %22, %23 : vector<8x16xf32>
    %c0_18 = arith.constant 0 : index
    %c0_19 = arith.constant 0 : index
    %25 = vector.load %arg8[%c0_18, %c0_19] : memref<8x16xf32, #tpu.memory_space<vmem>>, vector<8x16xf32>
    tpu.vector_store %arg8[%c0_18, %c0_19], %24 {strides = array<i32>} : memref<8x16xf32, #tpu.memory_space<vmem>>, vector<8x16xf32>,
    return
  }
  func.func @transform_0(%arg0: i32) -> (i32, i32) {
    %c0_i32 = arith.constant 0 : i32
    %c0_i32_0 = arith.constant 0 : i32
    return %arg0, %c0_i32 : i32, i32
  }
  func.func @transform_1(%arg0: i32) -> (i32, i32) {
    %c0_i32 = arith.constant 0 : i32
    %c0_i32_0 = arith.constant 0 : i32
    %c0_i32_1 = arith.constant 0 : i32
    return %c0_i32, %c0_i32_0 : i32, i32
  }
  func.func @transform_2(%arg0: i32) -> (i32, i32) {
    %c0_i32 = arith.constant 0 : i32
    %c0_i32_0 = arith.constant 0 : i32
    %c0_i32_1 = arith.constant 0 : i32
    return %c0_i32, %c0_i32_0 : i32, i32
  }
  func.func @transform_3(%arg0: i32) -> (i32, i32) {
    %c0_i32 = arith.constant 0 : i32
    %c0_i32_0 = arith.constant 0 : i32
    %c0_i32_1 = arith.constant 0 : i32
    return %c0_i32, %c0_i32_0 : i32, i32
  }
  func.func @transform_4(%arg0: i32) -> (i32, i32) {
    %c0_i32 = arith.constant 0 : i32
    %c0_i32_0 = arith.constant 0 : i32
    %c0_i32_1 = arith.constant 0 : i32
    return %c0_i32, %c0_i32_0 : i32, i32
  }
  func.func @transform_5(%arg0: i32) -> (i32, i32) {
    %c0_i32 = arith.constant 0 : i32
    %c0_i32_0 = arith.constant 0 : i32
    %c0_i32_1 = arith.constant 0 : i32
    return %c0_i32, %c0_i32_0 : i32, i32
  }
  func.func @transform_6(%arg0: i32) -> (i32, i32) {
    %c0_i32 = arith.constant 0 : i32
    %c0_i32_0 = arith.constant 0 : i32
    %c0_i32_1 = arith.constant 0 : i32
    return %c0_i32, %c0_i32_0 : i32, i32
  }
  func.func @transform_7(%arg0: i32) -> (i32, i32) {
    %c0_i32 = arith.constant 0 : i32
    %c0_i32_0 = arith.constant 0 : i32
    return %arg0, %c0_i32 : i32, i32
  }
}

</mosaic_0001>

<bundles_post_ra>
// kernel: _fused_mlp.1
= control target key start
LH: loop header
LB: loop body
LE: loop exit
PB: predicated region body
PF: predicated region fallthrough
CT: control target
= control target key end

     0   :  { %12 = vsyncpa [#allocation3], 0  ;;  %s419_s0 = inlined_call_operand.vmem [shape: f32[8,32], index: 0, kind: input, shape index: {}]   ;;  %s420_s1 = inlined_call_operand.hbm [shape: f32[32,128], index: 1, kind: input, shape index: {}]   ;;  %s421_s2 = inlined_call_operand.vmem [shape: f32[1,128], index: 2, kind: input, shape index: {}]   ;;  %s422_s3 = inlined_call_operand.vmem [shape: f32[128,128], index: 3, kind: input, shape index: {}]   ;;  %s423_s4 = inlined_call_operand.vmem [shape: f32[1,128], index: 4, kind: input, shape index: {}]   ;;  %s424_s5 = inlined_call_operand.vmem [shape: f32[128,16], index: 5, kind: input, shape index: {}]   ;;  %s425_s6 = inlined_call_operand.vmem [shape: f32[1,16], index: 6, kind: input, shape index: {}]   ;;  %s426_s7 = inlined_call_operand.hbm [shape: f32[8,16], index: 7, kind: output, shape index: {}]  }
   0x1   :  { %13 = vsyncpa [#allocation4], 0  ;;  %s20_s26 = sshll.u32 %s420_s1, 4  ;;  %s261_s27 = smov [#allocation2]   ;;  %s21_s26 = int_to_ptr.hbm [resolvable:$true] %s20_s26 }
   0x2   :  { %s22_s28 = sshll.u32 %s261_s27, 4  ;;  %s262_s29 = smov 128   ;;  %s23_s28 = int_to_ptr.vmem [resolvable:$true] %s22_s28 }
   0x3   :  { %s263_s30 = smov 8  }
   0x4   :  { %28 = dma.hbm_to_vmem [thread:$0]  %s21_s26, 512, %s23_s28, [#allocation3], %s262_s29, %s262_s29, %s263_s30  }
   0x5   :  { %257 = dma.done.wait [#allocation3], 512  }
   0x6   :  { %258 = vsyncadd [#allocation3], 4294966784  ;;  %v47_v0 = vld [vmem:[#allocation2 + $0x18] sm:$0xff]  ;;  %v46_v1 = vld [vmem:[#allocation2 + $0x10] sm:$0xff]  ;;  %vm52_vm0 = vcmask 261120   ;;  %vm177_vm4 = vcmask 130048  }
   0x7   :  { %68 = vmatpush.msra.mxu0 %v47_v0  ;;  %v92_v2 = vld [vmem:[%s422_s3 + $0x78] sm:$0xff]  ;;  %v45_v3 = vld [vmem:[#allocation2 + $0x8] sm:$0xff]  ;;  %v91_v4 = vld [vmem:[%s422_s3 + $0x70] sm:$0xff] }
   0x8   :  { %97 = vmatpush.msra.mxu1 %v92_v2  ;;  %v90_v5 = vld [vmem:[%s422_s3 + $0x68] sm:$0xff]  ;;  %v44_v6 = vld [vmem:[#allocation2] sm:$0xff]  ;;  %v88_v9 = vld [vmem:[%s422_s3 + $0x58] sm:$0xff] }
   0x9   :  { %69 = vmatpush.msra.mxu0 %v46_v1  ;;  %v43_v7 = vld [vmem:[%s419_s0] sm:$0xff]  ;;  %v87_v10 = vld [vmem:[%s422_s3 + $0x50] sm:$0xff]  ;;  %v86_v11 = vld [vmem:[%s422_s3 + $0x48] sm:$0xff] }
   0xa   :  { %98 = vmatpush.msra.mxu1 %v91_v4  ;;  %v89_v8 = vld [vmem:[%s422_s3 + $0x60] sm:$0xff]  ;;  %v84_v13 = vld [vmem:[%s422_s3 + $0x38] sm:$0xff]  ;;  %v83_v14 = vld [vmem:[%s422_s3 + $0x30] sm:$0xff] }
   0xb   :  { %70 = vmatpush.msra.mxu0 %v45_v3  ;;  %v85_v12 = vld [vmem:[%s422_s3 + $0x40] sm:$0xff]  ;;  %v82_v15 = vld [vmem:[%s422_s3 + $0x28] sm:$0xff]  ;;  %v80_v17 = vld [vmem:[%s422_s3 + $0x18] sm:$0xff] }
   0xc   :  { %99 = vmatpush.msra.mxu1 %v90_v5  ;;  %v81_v16 = vld [vmem:[%s422_s3 + $0x20] sm:$0xff]  ;;  %v79_v18 = vld [vmem:[%s422_s3 + $0x10] sm:$0xff]  ;;  %v78_v19 = vld [vmem:[%s422_s3 + $0x8] sm:$0xff] }
   0xd   :  { %71 = vmatpush.msra.mxu0 %v44_v6  ;;  %v77_v20 = vld [vmem:[%s422_s3] sm:$0xff]  ;;  %v133_v21 = vld [vmem:[%s424_s5 + $0x78] sm:$0xff]  ;;  %v132_v22 = vld [vmem:[%s424_s5 + $0x70] sm:$0xff] }
   0xe   :  { %196 = vmatmul.msk.f32.vlgmr.msra.gmra.mxu0 %vm52_vm0, %v43_v7  ;;  %100 = vmatpush.msra.mxu1 %v89_v8  ;;  %v131_v23 = vld [vmem:[%s424_s5 + $0x68] sm:$0xff]  ;;  %v130_v24 = vld [vmem:[%s424_s5 + $0x60] sm:$0xff]  ;;  %v129_v25 = vld [vmem:[%s424_s5 + $0x58] sm:$0xff] }
   0xf   :  { %138 = vmatpush.msra.mxu2 %v133_v21  ;;  %v128_v26 = vld [vmem:[%s424_s5 + $0x50] sm:$0xff]  ;;  %v127_v27 = vld [vmem:[%s424_s5 + $0x48] sm:$0xff]  ;;  %v126_v28 = vld [vmem:[%s424_s5 + $0x40] sm:$0xff] }
  0x10   :  { %101 = vmatpush.msra.mxu1 %v88_v9  ;;  %v125_v29 = vld [vmem:[%s424_s5 + $0x38] sm:$0xff]  ;;  %v124_v30 = vld [vmem:[%s424_s5 + $0x30] sm:$0xff]  ;;  %v123_v31 = vld [vmem:[%s424_s5 + $0x28] sm:$0xff] }
  0x11   :  { %139 = vmatpush.msra.mxu2 %v132_v22  ;;  %v122_v32 = vld [vmem:[%s424_s5 + $0x20] sm:$0xff]  ;;  %v121_v33 = vld [vmem:[%s424_s5 + $0x18] sm:$0xff]  ;;  %v120_v38 = vld [vmem:[%s424_s5 + $0x10] sm:$0xff] }
  0x12   :  { %102 = vmatpush.msra.mxu1 %v87_v10  ;;  %v202_v34 = vld [vmem:[%s421_s2] ss:$0 sm:$0xff]  ;;  %v119_v39 = vld [vmem:[%s424_s5 + $0x8] sm:$0xff] }
  0x13   :  { %140 = vmatpush.msra.mxu2 %v131_v23  ;;  %v118_v40 = vld [vmem:[%s424_s5] sm:$0xff] }
  0x14   :  { %103 = vmatpush.msra.mxu1 %v86_v11  ;;  %v203_v41 = vld [vmem:[%s423_s4] ss:$0 sm:$0xff]  ;;  %s264_s4 = smov [#allocation5]  }
  0x15   :  { %141 = vmatpush.msra.mxu2 %v130_v24  ;;  %v204_v45 = vld [vmem:[%s425_s6] ss:$0 sm:$0xff]  ;;  %s184_s5 = sshll.u32 %s264_s4, 4  ;;  %s186_s6 = sshll.u32 %s426_s7, 4  ;;  %s185_s5 = int_to_ptr.vmem [resolvable:$true] %s184_s5  ;;  %s187_s6 = int_to_ptr.hbm [resolvable:$true] %s186_s6 }
  0x16   :  { %104 = vmatpush.msra.mxu1 %v85_v12 }
  0x17   :  { %142 = vmatpush.msra.mxu2 %v129_v25 }
  0x18   :  { %105 = vmatpush.msra.mxu1 %v84_v13 }
  0x19   :  { %143 = vmatpush.msra.mxu2 %v128_v26 }
  0x1a   :  { %106 = vmatpush.msra.mxu1 %v83_v14 }
  0x1b   :  { %144 = vmatpush.msra.mxu2 %v127_v27 }
  0x1c   :  { %107 = vmatpush.msra.mxu1 %v82_v15 }
  0x1d   :  { %145 = vmatpush.msra.mxu2 %v126_v28 }
  0x1e   :  { %108 = vmatpush.msra.mxu1 %v81_v16 }
  0x1f   :  { %146 = vmatpush.msra.mxu2 %v125_v29 }
  0x20   :  { %109 = vmatpush.msra.mxu1 %v80_v17 }
  0x21   :  { %147 = vmatpush.msra.mxu2 %v124_v30 }
  0x22   :  { %110 = vmatpush.msra.mxu1 %v79_v18 }
  0x23   :  { %148 = vmatpush.msra.mxu2 %v123_v31 }
  0x24   :  { %111 = vmatpush.msra.mxu1 %v78_v19 }
  0x25   :  { %149 = vmatpush.msra.mxu2 %v122_v32 }
  0x26   :  { %112 = vmatpush.msra.mxu1 %v77_v20 }
  0x27   :  { %150 = vmatpush.msra.mxu2 %v121_v33 }
  0x29   :  { %151 = vmatpush.msra.mxu2 %v120_v38 }
  0x2b   :  { %152 = vmatpush.msra.mxu2 %v119_v39 }
  0x2d   :  { %153 = vmatpush.msra.mxu2 %v118_v40 }
  0x8b   :  { %v73_v35 = vpop.f32.mrf.mxu0 }
  0x8c   :  { %v74_v36 = vadd.f32 %v202_v34, %v73_v35 }
  0x8e   :  { %v76_v37 = vmax.f32 %v74_v36, 0.0 }
  0x90   :  { %113 = vmatmul.f32.vlgmr.msra.gmra.mxu1 %v76_v37 }
 0x10d   :  { %v114_v42 = vpop.f32.mrf.mxu1 }
 0x10e   :  { %v115_v43 = vadd.f32 %v203_v41, %v114_v42 }
 0x110   :  { %v117_v44 = vmax.f32 %v115_v43, 0.0 }
 0x112   :  { %154 = vmatmul.f32.vlgmr.msra.gmra.mxu2 %v117_v44 }
 0x195   :  { %v155_v46 = vpop.f32.mrf.mxu2 }
 0x196   :  { %v156_v47 = vadd.f32 %v204_v45, %v155_v46 }
 0x198   :  { %v197_v48 = vmul.f32 -1.442695, %v156_v47 }
 0x19a   :  { %205 = vpow2.f32 %v197_v48 }
 0x1a0   :  { %v206_v49 = vpop.eup %205 }
 0x1a1   :  { %v161_v50 = vadd.f32 1.0, %v206_v49 }
 0x1a3   :  { %207 = vrcp.f32 %v161_v50  ;;  %v173_v54 = vand.u32 2147483648, %v161_v50  ;;  %v171_v56 = vand.u32 2147483647, %v161_v50  ;;  %vm167_vm2 = vweird.f32 %v161_v50 }
 0x1a5   :  { %v174_v58 = vor.u32 1.1754944e-38, %v173_v54  ;;  %vm172_vm5 = vcmp.eq.f32.partialorder %v171_v56, 8.507059e+37 }
 0x1a9   :  { %v208_v51 = vpop.eup %207 }
 0x1aa   :  { %v163_v52 = vmul.f32 %v208_v51, %v161_v50  ;;  %vm168_vm1 = vweird.f32 %v208_v51 }
 0x1ab   :  { %vm169_vm3 = vmor %vm167_vm2, %vm168_vm1 }
 0x1ac   :  { %v164_v53 = vsub.f32 1.0, %v163_v52 }
 0x1ae   :  { %v165_v55 = vmul.f32 %v208_v51, %v164_v53 }
 0x1b0   :  { %v166_v57 = vadd.f32 %v208_v51, %v165_v55 }
 0x1b2   :  { %v170_v59 = vsel %vm169_vm3, %v208_v51, %v166_v57 }
 0x1b3   :  { %v175_v60 = vsel %vm172_vm5, %v174_v58, %v170_v59 }
 0x1b4   :  { %178 = vst.msk [vmem:[#allocation5] sm:$0xff] %vm177_vm4, %v175_v60 }
 0x1b5   :  { %189 = dma.vmem_to_hbm [thread:$0]  %s185_s5, 128, %s187_s6, [#allocation4]  }
 0x1b6   :  { %259 = dma.done.wait [#allocation4], 128  }
 0x1b7   :  { %260 = vsyncadd [#allocation4], 4294967168 }
 0x1b8   :  { %194 = vsyncpa [#allocation3], 1 }
 0x1b9   :  { %195 = vsyncpa [#allocation4], 1 }

</bundles_post_ra>
